<compile_context>
chip_gen: v5e
topology: v5e:2x2
jax: 0.10.0
libtpu: 0.0.40
codegen_flags: <defaults>
</compile_context>

<pallas_src>
import functools
import math

import numpy as np
import jax
import jax.numpy as jnp
from jax.experimental import pallas as pl
from jax.experimental.pallas import tpu as pltpu

PI = math.pi
SQRT2 = math.sqrt(2.0)

_LANE = 128
_SUBLANE = 8
_TARGET_TILE = 1024  # multiple of 128; 2 MiB bf16 tiles, safe on v5e/v6e/v7x


def _round_up(x, m):
    return ((x + m - 1) // m) * m


# ---------------------------------------------------------------------------
# Static grid construction (host-side NumPy) — mirrors IPartialRadon.__init__
# ---------------------------------------------------------------------------
def _create_yxgrid(in_size, circle):
    if not circle:
        in_size = int(math.ceil(SQRT2 * in_size))
    unitrange = np.linspace(-1.0, 1.0, in_size, dtype=np.float32)
    ygrid, xgrid = np.meshgrid(unitrange, unitrange, indexing="ij")  # torch 'ij'
    return ygrid, xgrid


def _create_fullgrid(ygrid, xgrid):
    thetagrid = (np.arctan2(ygrid, xgrid) * 180.0 / PI).astype(np.float32)
    pos = thetagrid >= 0
    thetagrid = np.where(pos, 180.0 - thetagrid, thetagrid)
    thetagrid = np.abs(thetagrid)
    thetagrid = (thetagrid - 90.0) / 90.0
    rgrid = np.sqrt(xgrid ** 2 + ygrid ** 2) * (1.0 - 2.0 * (ygrid >= 0).astype(np.float32))
    return np.stack((thetagrid, rgrid), axis=-1).astype(np.float32)  # (S, S, 2)


def _grid_sample_matrix(full_grid, h_in, w_in):
    """Dense (P, Q) matrix equivalent to F.grid_sample(bilinear, zeros, align_corners=False)."""
    gx = full_grid[..., 0].reshape(-1).astype(np.float64)  # width coord
    gy = full_grid[..., 1].reshape(-1).astype(np.float64)  # height coord
    ix = ((gx + 1.0) * w_in - 1.0) / 2.0
    iy = ((gy + 1.0) * h_in - 1.0) / 2.0
    ix0 = np.floor(ix).astype(np.int64)
    iy0 = np.floor(iy).astype(np.int64)
    ix1, iy1 = ix0 + 1, iy0 + 1
    fx, fy = ix - ix0, iy - iy0

    p = gx.shape[0]
    q = h_in * w_in
    w_mat = np.zeros((p, q), dtype=np.float32)
    rows = np.arange(p)
    corners = [
        (iy0, ix0, (1.0 - fx) * (1.0 - fy)),
        (iy0, ix1, fx * (1.0 - fy)),
        (iy1, ix0, (1.0 - fx) * fy),
        (iy1, ix1, fx * fy),
    ]
    for yy, xx, w in corners:
        valid = (yy >= 0) & (yy < h_in) & (xx >= 0) & (xx < w_in)
        cols = np.clip(yy, 0, h_in - 1) * w_in + np.clip(xx, 0, w_in - 1)
        np.add.at(w_mat, (rows[valid], cols[valid]), w[valid].astype(np.float32))
    return w_mat  # (P, Q)


@functools.lru_cache(maxsize=8)
def _build_weights(in_size, h_in, w_in, circle, tk, tn):
    """Build bf16 Wt (Q_pad, P_pad) with the circle mask folded in, plus the
    block-sparse scalar-prefetch table of nonzero k-block indices per n-block."""
    ygrid, xgrid = _create_yxgrid(in_size, circle)
    full_grid = _create_fullgrid(ygrid, xgrid)          # (S, S, 2)
    s = full_grid.shape[0]
    p = s * s
    q = h_in * w_in
    w_mat = _grid_sample_matrix(full_grid, h_in, w_in)  # (P, Q)
    if circle:
        mask = ((xgrid ** 2 + ygrid ** 2) <= 1.0).reshape(-1).astype(np.float32)
        w_mat = w_mat * mask[:, None]                   # fold mask into weights

    q_pad = _round_up(q, tk)
    p_pad = _round_up(p, tn)
    wt = np.zeros((q_pad, p_pad), dtype=np.float32)
    wt[:q, :p] = w_mat.T
    n_kb = q_pad // tk
    n_nb = p_pad // tn

    # Block-nonzero map: nz[kb, nb] == True iff tile Wt[kb*tk:(kb+1)*tk, nb*tn:(nb+1)*tn] != 0
    nz = np.abs(wt).reshape(n_kb, tk, n_nb, tn).sum(axis=(1, 3)) > 0
    counts = nz.sum(axis=0)                              # nonzero k-blocks per n-block
    kmax = int(max(1, counts.max()))
    kidx = np.zeros((n_nb, kmax), dtype=np.int32)
    for nb in range(n_nb):
        nzk = np.nonzero(nz[:, nb])[0]
        zk = np.nonzero(~nz[:, nb])[0]
        # Pad ragged rows with an IN-RANGE all-zero block index (contribution == 0).
        pad_val = int(zk[0]) if zk.size else int(nzk[0])
        row = np.full((kmax,), pad_val, dtype=np.int32)
        row[: nzk.size] = nzk.astype(np.int32)
        kidx[nb] = row

    wt_dev = jnp.asarray(wt, dtype=jnp.bfloat16)
    kidx_dev = jnp.asarray(kidx.reshape(-1), dtype=jnp.int32)   # 1D -> minimal SMEM padding
    return wt_dev, kidx_dev, kmax, q_pad, n_kb


# ---------------------------------------------------------------------------
# Pallas kernel: block-sparse tiled  reco = x_flat @ Wt  (mask folded into Wt)
# ---------------------------------------------------------------------------
def _radon_kernel(kmax, kidx_ref, x_ref, wt_ref, o_ref):
    n = pl.program_id(0)
    k = pl.program_id(1)

    @pl.when(k == 0)
    def _():
        o_ref[...] = jnp.zeros_like(o_ref)

    kblk = kidx_ref[n * kmax + k]          # SMEM scalar: actual k-block for this step
    x_blk = x_ref[kblk]                    # (b_pad, tk) bf16 slab of VMEM-resident input
    o_ref[...] += jnp.dot(x_blk, wt_ref[...], preferred_element_type=jnp.float32)


def _radon_pallas(x3d, wt, kidx, kmax, tk, tn):
    n_kb, b_pad, _ = x3d.shape
    q_pad = n_kb * tk
    _, p_pad = wt.shape
    n_nb = p_pad // tn
    grid = (n_nb, kmax)                    # (n parallel, compacted-k reduction last)

    vmem_bytes = (2 * tk * tn * 2          # double-buffered bf16 Wt tiles (dominant)
                  + 2 * q_pad * b_pad * 2  # resident bf16 x (counted twice for safety)
                  + 2 * b_pad * tn * 4)    # resident f32 output block
    vmem_limit = int(min(48 << 20, max(32 << 20, 2 * vmem_bytes)))

    cost = pl.CostEstimate(
        flops=2 * b_pad * tk * tn * n_nb * kmax,
        transcendentals=0,
        bytes_accessed=2 * tk * tn * n_nb * kmax + 2 * b_pad * q_pad + 4 * b_pad * p_pad,
    )

    return pl.pallas_call(
        functools.partial(_radon_kernel, kmax),
        out_shape=jax.ShapeDtypeStruct((b_pad, p_pad), jnp.float32),
        grid_spec=pltpu.PrefetchScalarGridSpec(
            num_scalar_prefetch=1,
            grid=grid,
            in_specs=[
                # x: full-extent, constant index_map -> DMA'd once, stays VMEM-resident.
                pl.BlockSpec((n_kb, b_pad, tk), lambda n, k, kt: (0, 0, 0)),
                # Wt: data-dependent k-block index -> all-zero tiles are never streamed.
                pl.BlockSpec((tk, tn), lambda n, k, kt: (kt[n * kmax + k], n)),
            ],
            out_specs=pl.BlockSpec((b_pad, tn), lambda n, k, kt: (0, n)),  # resident across k
        ),
        compiler_params=pltpu.CompilerParams(
            dimension_semantics=("parallel", "arbitrary"),
            vmem_limit_bytes=vmem_limit,
        ),
        cost_estimate=cost,
    )(kidx, x3d, wt)


# ---------------------------------------------------------------------------
# Forward wrapper mirroring IPartialRadon.forward (circle=True path)
# ---------------------------------------------------------------------------
def ipartial_radon_forward(x, in_size=None, circle=True):
    # TODO(synk): circle=False crop path (F.pad with negative widths) not implemented.
    assert circle, "only circle=True is implemented"
    ba_size = x.shape[0]
    h_in, w_in = int(x.shape[2]), int(x.shape[3])
    if in_size is None:
        in_size = h_in  # circle=True branch of the reference forward

    s = int(in_size)
    p = s * s
    q = h_in * w_in

    tn = min(_TARGET_TILE, _round_up(p, _LANE))  # lane-dense output tile
    # v7x megacore: ensure the parallel axis has >= 2 n-blocks when possible.
    if _round_up(p, tn) == tn and tn > _LANE:
        tn = max(_LANE, ((tn // 2) // _LANE) * _LANE)
    tk = min(_TARGET_TILE, _round_up(q, _LANE))

    wt, kidx, kmax, q_pad, n_kb = _build_weights(s, h_in, w_in, bool(circle), int(tk), int(tn))

    b_pad = _round_up(max(ba_size, 1), _SUBLANE)  # full sublanes, unmasked stores
    x_flat = x[:, 0, :, :].reshape(ba_size, q).astype(jnp.bfloat16)
    x_flat = jnp.pad(x_flat, ((0, b_pad - ba_size), (0, q_pad - q)))
    x3d = x_flat.reshape(b_pad, n_kb, tk).transpose(1, 0, 2)  # (n_kb, b_pad, tk)

    reco = _radon_pallas(x3d, wt, kidx, kmax, tk, tn)  # (b_pad, p_pad) f32
    reco = reco[:ba_size, :p]
    return reco.reshape(ba_size, 1, s, s)


if __name__ == "__main__":
    key = jax.random.PRNGKey(0)
    x = jax.random.normal(key, (2, 4, 16, 16), dtype=jnp.float32)

    reco = ipartial_radon_forward(x)
    reco = jax.block_until_ready(reco)

    # Host-side reference with the same bf16-quantized weights/inputs, f32 accumulation.
    def _bf16(a):
        return np.asarray(jnp.asarray(a, dtype=jnp.bfloat16).astype(jnp.float32))

    ygrid, xgrid = _create_yxgrid(16, True)
    full_grid = _create_fullgrid(ygrid, xgrid)
    w_mat = _grid_sample_matrix(full_grid, 16, 16)
    mask = ((xgrid ** 2 + ygrid ** 2) <= 1.0).astype(np.float32).reshape(-1)
    w_bf = _bf16(w_mat * mask[:, None])                  # (P, Q)
    x_bf = _bf16(np.asarray(x)[:, 0].reshape(2, -1))     # (B, Q)
    ref = (x_bf @ w_bf.T).reshape(2, 1, 16, 16)

    assert reco.shape == (2, 1, 16, 16)
    np.testing.assert_allclose(np.asarray(reco), ref, rtol=2e-3, atol=2e-3)
    print("KERNEL_OK")
</pallas_src>

<mosaic_0001>
module attributes {stable_mosaic.version = 11 : i64} {
  func.func @_radon_kernel(%arg0: i32, %arg1: i32, %arg2: memref<2xi32, #tpu.memory_space<smem>>, %arg3: memref<1x8x256xbf16, #tpu.memory_space<vmem>>, %arg4: memref<256x128xbf16, #tpu.memory_space<vmem>>, %arg5: memref<8x128xf32, #tpu.memory_space<vmem>>) attributes {dimension_semantics = [#tpu.dimension_semantics<parallel>, #tpu.dimension_semantics<arbitrary>], iteration_bounds = array<i64: 2, 1>, scalar_prefetch = 1 : i64, scratch_operands = 0 : i64, tpu.core_type = #tpu.core_type<tc>, window_params = [{pipeline_mode = #tpu.pipeline_mode<synchronous>, transform_indices = @transform_0, window_bounds = array<i64: 1, 8, 256>}, {transform_indices = @transform_1, window_bounds = array<i64: 256, 128>}, {transform_indices = @transform_2, window_bounds = array<i64: 8, 128>}]} {
    %c0_i32 = arith.constant 0 : i32
    %0 = arith.cmpi eq, %arg1, %c0_i32 : i32
    %1 = arith.extui %0 : i1 to i32
    %c0_i32_0 = arith.constant 0 : i32
    %2 = arith.cmpi ne, %1, %c0_i32_0 : i32
    scf.if %2 {
      %cst_8 = arith.constant 0.000000e+00 : f32
      %15 = vector.broadcast %cst_8 : f32 to vector<8x128xf32>
      %c0_9 = arith.constant 0 : index
      %c0_10 = arith.constant 0 : index
      %16 = vector.load %arg5[%c0_9, %c0_10] : memref<8x128xf32, #tpu.memory_space<vmem>>, vector<8x128xf32>
      tpu.vector_store %arg5[%c0_9, %c0_10], %15 {strides = array<i32>} : memref<8x128xf32, #tpu.memory_space<vmem>>, vector<8x128xf32>,
    } else {
    }
    %c1_i32 = arith.constant 1 : i32
    %3 = arith.muli %arg0, %c1_i32 : i32
    %4 = arith.addi %3, %arg1 : i32
    %5 = arith.index_cast %4 : i32 to index
    %6 = memref.load %arg2[%5] : memref<2xi32, #tpu.memory_space<smem>>
    %7 = arith.index_cast %6 : i32 to index
    %c0 = arith.constant 0 : index
    %c0_1 = arith.constant 0 : index
    %8 = vector.load %arg3[%7, %c0, %c0_1] : memref<1x8x256xbf16, #tpu.memory_space<vmem>>, vector<1x8x256xbf16>
    %9 = vector.shape_cast %8 : vector<1x8x256xbf16> to vector<8x256xbf16>
    %c0_2 = arith.constant 0 : index
    %c0_3 = arith.constant 0 : index
    %10 = vector.load %arg5[%c0_2, %c0_3] : memref<8x128xf32, #tpu.memory_space<vmem>>, vector<8x128xf32>
    %c0_4 = arith.constant 0 : index
    %c0_5 = arith.constant 0 : index
    %11 = vector.load %arg4[%c0_4, %c0_5] : memref<256x128xbf16, #tpu.memory_space<vmem>>, vector<256x128xbf16>
    %cst = arith.constant dense<0.000000e+00> : vector<8x128xf32>
    %12 = tpu.matmul %9, %11, %cst {dimension_numbers = #tpu.dot_dimension_numbers<[1], [0], [0], [1], [0, 0, 1, 1], [], []>} : vector<8x256xbf16>, vector<256x128xbf16>, vector<8x128xf32> -> vector<8x128xf32>
    %13 = arith.addf %10, %12 : vector<8x128xf32>
    %c0_6 = arith.constant 0 : index
    %c0_7 = arith.constant 0 : index
    %14 = vector.load %arg5[%c0_6, %c0_7] : memref<8x128xf32, #tpu.memory_space<vmem>>, vector<8x128xf32>
    tpu.vector_store %arg5[%c0_6, %c0_7], %13 {strides = array<i32>} : memref<8x128xf32, #tpu.memory_space<vmem>>, vector<8x128xf32>,
    return
  }
  func.func @transform_0(%arg0: i32, %arg1: i32, %arg2: memref<2xi32, #tpu.memory_space<smem>>) -> (i32, i32, i32) {
    %c0_i32 = arith.constant 0 : i32
    %c0_i32_0 = arith.constant 0 : i32
    %c0_i32_1 = arith.constant 0 : i32
    %c0_i32_2 = arith.constant 0 : i32
    return %c0_i32, %c0_i32_0, %c0_i32_1 : i32, i32, i32
  }
  func.func @transform_1(%arg0: i32, %arg1: i32, %arg2: memref<2xi32, #tpu.memory_space<smem>>) -> (i32, i32) {
    %c1_i32 = arith.constant 1 : i32
    %0 = arith.muli %arg0, %c1_i32 : i32
    %1 = arith.addi %0, %arg1 : i32
    %2 = arith.index_cast %1 : i32 to index
    %3 = memref.load %arg2[%2] : memref<2xi32, #tpu.memory_space<smem>>
    %c0_i32 = arith.constant 0 : i32
    return %3, %arg0 : i32, i32
  }
  func.func @transform_2(%arg0: i32, %arg1: i32, %arg2: memref<2xi32, #tpu.memory_space<smem>>) -> (i32, i32) {
    %c0_i32 = arith.constant 0 : i32
    %c0_i32_0 = arith.constant 0 : i32
    return %c0_i32, %arg0 : i32, i32
  }
}

</mosaic_0001>

<bundles_post_ra>
// kernel: tpu_custom_call.1
= control target key start
LH: loop header
LB: loop body
LE: loop exit
PB: predicated region body
PF: predicated region fallthrough
CT: control target
= control target key end

     0   :  { %s891_s15 = smov [#allocation3]   ;;  %s1130_s0 = inlined_call_operand.hbm [shape: s32[2], index: 0, kind: input, shape index: {}]   ;;  %s1131_s1 = inlined_call_operand.hbm [shape: bf16[1,8,256], index: 1, kind: input, shape index: {}]   ;;  %s1132_s2 = inlined_call_operand.hbm [shape: bf16[256,256], index: 2, kind: input, shape index: {}]   ;;  %s1133_s3 = inlined_call_operand.hbm [shape: f32[8,256], index: 3, kind: output, shape index: {}]  }
   0x1   :  { %1137 = sst [smem:[#allocation21_spill]] %s1131_s1  ;;  %s9_s14 = sshll.u32 %s1130_s0, 4  ;;  %s10_s14 = int_to_ptr.hbm [resolvable:$true] %s9_s14 }
   0x2   :  { %12 = dma.hbm_to_smem %s10_s14, 16, %s891_s15, [#allocation2] }
   0x3   :  { %841 = dma.done.wait [#allocation2], 16 }
   0x4   :  { %842 = vsyncadd [#allocation2], 4294967280 }
   0x5   :  { %15 = sfence }
   0x6   :  { %16 = vsyncpa [#allocation5], 0 }
   0x7   :  { %17 = vsyncpa [#allocation8], 0 }
   0x8   :  { %19 = vsyncpa [#allocation8 + $0x1], 0 }
   0x9   :  { %20 = vsyncpa [#allocation6], 0 }
   0xa   :  { %22 = vsyncpa [#allocation6 + $0x1], 0  ;;  %s919_s16 = smov 0   ;;  %s921_s17 = smov 0  }
   0xb   :  { %s923_s18 = smov 0   ;;  %s925_s19 = smov 0  }
   0xc   :  { %s927_s0 = smov 0   ;;  %s929_s20 = smov 0  }
   0xd   :  { %s931_s21 = smov 0   ;;  %s933_s22 = smov 0  }
   0xe   :  { %s935_s23 = smov 0  }
   0xf LB: > { %1138 = sst [smem:[#allocation16_spill]] %s865_s18  ;;  %s498_s24 = sadd.s32 4294967295, %s889_s23   ;;  %s889_s23 = sphi %s935_s23, %s28_s23   ;;  %s885_s22 = sphi %s933_s22, %s1162_s22   ;;  %s881_s21 = sphi %s931_s21, %s1161_s21   ;;  %s877_s20 = sphi %s929_s20, %s1155_s20   ;;  %s873_s0 = sphi %s927_s0, %s1160_s0   ;;  %s869_s19 = sphi %s925_s19, %s1159_s19   ;;  %s865_s18 = sphi %s923_s18, %s1153_s18   ;;  %s861_s17 = sphi %s921_s17, %s1158_s17   ;;  %s857_s16 = sphi %s919_s16, %s1157_s16  }
  0x10   : > { %1139 = sst [smem:[#allocation17_spill]] %s877_s20  ;;  %s499_s25 = sadd.s32 4294967294, %s889_s23  }
  0x11   : > { %s40_s26 = sadd.s32 1, %s885_s22  ;;  %s66_s27 = sld [smem:[#allocation3 + %s885_s22]] }
  0x12   : > { %p42_p0 = scmp.ge.s32.totalorder %s40_s26, 2  ;;  %s74_s28 = sadd.s32 1, %s877_s20 }
  0x13   : > { %p81_p1 = scmp.ne.s32.totalorder %s877_s20, %s873_s0  ;;  %p82_p2 = scmp.eq.s32.totalorder %s889_s23, 0 }
  0x14   : > { %s1164_s26 = smov (%p42_p0, %s40_s26), 0  ;;  %p87_p4 = scmp.ne.s32.totalorder %s873_s0, %s869_s19 }
  0x15   : > { %1140 = sst [smem:[#allocation18_spill]] %s1164_s26  ;;  %p972_p3 = por %p82_p2, %p81_p1 }
  0x16   : > { %s68_s30 = sld [smem:[#allocation3 + %s1164_s26]]  ;;  %s70_s4 = ssub.s32 %s885_s22, %s1164_s26 }
  0x17   : > { %p980_p5 = scmp.eq.s32.totalorder %s498_s24, 0  ;;  %p98_p6 = scmp.eq.s32.totalorder %s70_s4, 0 }
  0x18   : > { %s100_s6 = sadd.s32 1, %s865_s18  ;;  %p110_p7 = scmp.ne.s32.totalorder %s865_s18, %s861_s17 }
  0x19   : > { %p989_p8 = por %p980_p5, %p87_p4  ;;  %p111_p9 = scmp.eq.s32.totalorder %s498_s24, 1 }
  0x1a   : > { %s994_s8 = scalar_select %p98_p6, %s865_s18, %s100_s6  }
  0x1b   : > { %p996_p10 = por %p111_p9, %p110_p7  ;;  %p116_p11 = scmp.ne.s32.totalorder %s861_s17, %s857_s16 }
  0x1c   : > { %1144 = sst [smem:[#allocation19_spill]] %s994_s8  ;;  %s69_s10 = ssub.s32 %s66_s27, %s68_s30 }
  0x1d   : > { %p117_p12 = scmp.eq.s32.totalorder %s499_s25, 1  ;;  %s71_s11 = sor.u32 %s70_s4, %s69_s10 }
  0x1e   : > { %p500_p13 = scmp.ge.s32.totalorder %s889_s23, 1  ;;  %p72_p0 = scmp.eq.s32.totalorder %s71_s11, 0 }
  0x1f   : > { %p1003_p1 = por %p117_p12, %p116_p11  ;;  %p124_p2 = scmp.lt.s32.totalorder %s889_s23, 3 }
  0x20   : > { %s1009_s13 = scalar_select %p72_p0, %s877_s20, %s74_s28  }
  0x21   : > { %p1011_p4 = pnand %p500_p13, %p124_p2  ;;  %s1149_s1 = sld [smem:[#allocation21_spill]] }
  0x22   : > { %1147 = sst [smem:[#allocation20_spill]] %s1009_s13  ;;  %s892_s25 = smov [#allocation4]  }
  0x23   : > { %p609_p6 = pneg %p1011_p4  ;;  %s138_s27 = sshll.u32 %s892_s25, 4  ;;  %s139_s27 = int_to_ptr.vmem [resolvable:$true] %s138_s27 }
  0x24   : > { %p624_p11 = scmp.lt.s32.totalorder %s889_s23, 2  ;;  %s149_s6 = sand.u32 1, %s877_s20  }
  0x25   : > { %p610_p9 = pnand %p609_p6, %p980_p5  ;;  %s503_s10 = sshll.u32 %s149_s6, 7 }
  0x26   : > { %s601_s28 = scalar_select %p972_p3, [#allocation3], [#allocation10] }
  0x27   : > { %s136_s24 = sshll.u32 %s1149_s1, 4  ;;  %p1028_p12 = pnand %p624_p11, %p972_p3  ;;  %s137_s24 = int_to_ptr.hbm [resolvable:$true] %s136_s24 }
  0x28   : > { %612 = dma.hbm_to_vmem [thread:$0]  (!%p610_p9), %s137_s24, 128, %s139_s27, [#allocation5]  }
  0x29   : > { %s602_s4 = scalar_select %p972_p3, %s885_s22, 0 }
  0x2a   : > { %s1166_s28 = smov (!%p624_p11, %s601_s28), [#allocation11]  ;;  %s153_s15 = scalar_lea.vmem [#allocation7], %s503_s10 }
  0x2b   : > { %s1168_s4 = smov (!%p624_p11, %s602_s4), 0  ;;  %s1036_s19 = sshll.u32 %s153_s15, 4  ;;  %s166_s19 = int_to_ptr.vmem [resolvable:$true] %s1036_s19 }
  0x2c   : > { %s155_s11 = sld [smem:[%s1166_s28 + %s1168_s4]]  ;;  %s150_s27 = scalar_lea.sflag [#allocation8], %s149_s6 }
  0x2d   : > { %p751_p13 = pneg %p1028_p12 }
  0x32   : > { %s581_s25 = sshll.u32 %s155_s11, 6 }
  0x33   : > { %s160_s1 = sadd.s32 %s885_s22, %s581_s25 }
  0x34   : > { %s506_s26 = sshll.u32 %s160_s1, 2  ;;  %s754_s1 = scalar_lea.hbm %s1132_s2, 256 }
  0x35   : > { %s162_s24 = scalar_lea.hbm %s1132_s2, %s506_s26 }
  0x36   : > { %s163_s29 = sshll.u32 %s162_s24, 4  ;;  %s164_s29 = int_to_ptr.hbm [resolvable:$true] %s163_s29 }
  0x37   : > { %s747_s20 = sshra.s32 %s164_s29, 4  ;;  %s748_s20 = int_to_ptr.hbm [resolvable:$true] %s747_s20 }
  0x38   : > { %s749_s18 = scalar_lea.hbm %s748_s20, 128  ;;  %p755_p6 = scmp.lt.s32.totalorder %s748_s20, %s1132_s2 }
  0x39   : > { %p750_p3 = scmp.ne.s32.totalorder %s748_s20, %s749_s18  ;;  %p756_p9 = scmp.lt.s32.totalorder %s754_s1, %s749_s18 }
  0x3b   : > { %p752_p0 = pnand %p751_p13, %p750_p3  ;;  %p757_p11 = por %p756_p9, %p755_p6 }
  0x3d   : > { %p753_p2 = pneg %p752_p0 }
  0x3f   : > { %p758_p7 = pnand %p757_p11, %p753_p2 }
  0x41   : > { %761 = shalt.err (!%p758_p7)
}
  0x42   : > { %s893_s26 = smov 128   ;;  %s894_s8 = smov 64  }
  0x43   : > { %s895_s13 = smov 4   ;;  %177 = sbr.rel (%p1011_p4) target bundleno = 244 (0xf4), region = 28 }
  0x44   : > { %618 = dma.hbm_to_vmem [thread:$0]  (!%p1028_p12), %s164_s29, 2048, %s166_s19, %s150_s27, %s893_s26, %s894_s8, %s895_s13  }
  0x48   : > { %844 = dma.done.wait (%p980_p5), [#allocation5], 128  }
  0x49   : > { %846 = vsyncadd (%p980_p5), [#allocation5], 4294967168  ;;  %s184_s18 = sand.u32 1, %s873_s0  }
  0x4a   : > { %s509_s20 = sshll.u32 %s184_s18, 7  ;;  %s185_s6 = scalar_lea.sflag [#allocation8], %s184_s18 }
  0x4b   : > { %s1060_s15 = scalar_lea.vmem [#allocation7], %s509_s20 }
  0x4c   : > { %848 = dma.done.wait (%p989_p8), %s185_s6, 2048  }
  0x4d   : > { %850 = vsyncadd (%p989_p8), %s185_s6, 4294965248  ;;  %v590_v0 = vld [vmem:[%s1060_s15 + $0x38] sm:$0xff]  ;;  %v589_v2 = vld [vmem:[%s1060_s15 + $0x30] sm:$0xff]  ;;  %s219_s5 = sld [smem:[#allocation3 + %s881_s21]]  ;;  %s207_s30 = sand.u32 1, %s861_s17  }
  0x4e   : > { %v598_v1 = vld [vmem:[%s1060_s15 + $0x78] sm:$0xff]  ;;  %360 = vmatpush.bf16.msra.mxu0 %v590_v0  ;;  %v597_v3 = vld [vmem:[%s1060_s15 + $0x70] sm:$0xff]  ;;  %v588_v4 = vld [vmem:[%s1060_s15 + $0x28] sm:$0xff]  ;;  %s510_s19 = sshll.u32 %s207_s30, 3  ;;  %s578_s25 = sshll.u32 %s881_s21, 3 }
  0x4f   : > { %373 = vmatpush.bf16.msra.mxu1 %v598_v1  ;;  %v596_v5 = vld [vmem:[%s1060_s15 + $0x68] sm:$0xff]  ;;  %v587_v6 = vld [vmem:[%s1060_s15 + $0x20] sm:$0xff]  ;;  %v586_v8 = vld [vmem:[%s1060_s15 + $0x18] sm:$0xff]  ;;  %s399_s27 = scalar_lea.hbm %s1133_s3, %s578_s25  ;;  %s209_s28 = scalar_lea.vmem [#allocation9], %s510_s19 }
  0x50   : > { %v595_v7 = vld [vmem:[%s1060_s15 + $0x60] sm:$0xff]  ;;  %v594_v9 = vld [vmem:[%s1060_s15 + $0x58] sm:$0xff]  ;;  %v585_v10 = vld [vmem:[%s1060_s15 + $0x10] sm:$0xff]  ;;  %s401_s4 = sshll.u32 %s209_s28, 4  ;;  %s403_s1 = sshll.u32 %s399_s27, 4  ;;  %s402_s4 = int_to_ptr.vmem [resolvable:$true] %s401_s4  ;;  %s404_s1 = int_to_ptr.hbm [resolvable:$true] %s403_s1 }
  0x51   : > { %v593_v11 = vld [vmem:[%s1060_s15 + $0x50] sm:$0xff]  ;;  %v584_v12 = vld [vmem:[%s1060_s15 + $0x8] sm:$0xff]  ;;  %v583_v17 = vld [vmem:[%s1060_s15] sm:$0xff]  ;;  %s389_s10 = scalar_lea.sflag [#allocation6], %s207_s30  ;;  %s791_s11 = sshra.s32 %s404_s1, 4  ;;  %s792_s11 = int_to_ptr.hbm [resolvable:$true] %s791_s11 }
  0x52   : > { %361 = vmatpush.bf16.msra.mxu0 %v589_v2  ;;  %v592_v13 = vld [vmem:[%s1060_s15 + $0x48] sm:$0xff]  ;;  %v591_v18 = vld [vmem:[%s1060_s15 + $0x40] sm:$0xff]  ;;  %s793_s26 = scalar_lea.hbm %s792_s11, 8  ;;  %s797_s13 = scalar_lea.hbm %s1133_s3, 16 }
  0x53   : > { %374 = vmatpush.bf16.msra.mxu1 %v597_v3  ;;  %s582_s7 = sshll.u32 %s219_s5, 3  ;;  %p794_p5 = scmp.ne.s32.totalorder %s792_s11, %s793_s26 }
  0x54   : > { %s222_s14 = scalar_lea.vmem [#allocation4], %s582_s7  ;;  %p798_p7 = scmp.lt.s32.totalorder %s792_s11, %s1133_s3 }
  0x55   : > { %v223_v14 = vld [vmem:[%s222_s14] sm:$0xff]  ;;  %p795_p8 = pnand %p794_p5, %p996_p10  ;;  %p799_p12 = scmp.lt.s32.totalorder %s797_s13, %s793_s26 }
  0x56   : > { %362 = vmatpush.bf16.msra.mxu0 %v588_v4  ;;  %v258_v15 = vunpack.c.l.b16 %v223_v14  ;;  %v259_v16 = vunpack.c.h.b16 %v223_v14 }
  0x57   : > { %375 = vmatpush.bf16.msra.mxu1 %v596_v5  ;;  %p796_p4 = pneg %p795_p8  ;;  %p800_p3 = por %p799_p12, %p798_p7 }
  0x58   : > { %v260_v19 = vpack.c.b16 %v258_v15, %v258_v15  ;;  %v261_v20 = vpack.c.b16 %v259_v16, %v259_v16 }
  0x59   : > { %p801_p13 = pnand %p800_p3, %p796_p4 }
  0x5a   : > { %363 = vmatpush.bf16.msra.mxu0 %v587_v6 }
  0x5b   : > { %376 = vmatpush.bf16.msra.mxu1 %v595_v7 }
  0x5e   : > { %364 = vmatpush.bf16.msra.mxu0 %v586_v8 }
  0x5f   : > { %377 = vmatpush.bf16.msra.mxu1 %v594_v9 }
  0x62   : > { %365 = vmatpush.bf16.msra.mxu0 %v585_v10 }
  0x63   : > { %378 = vmatpush.bf16.msra.mxu1 %v593_v11 }
  0x66   : > { %366 = vmatpush.bf16.msra.mxu0 %v584_v12 }
  0x67   : > { %379 = vmatpush.bf16.msra.mxu1 %v592_v13 }
  0x6a   : > { %367 = vmatpush.bf16.msra.mxu0 %v583_v17 }
  0x6b   : > { %380 = vmatpush.bf16.msra.mxu1 %v591_v18 }
  0x6d   : > { %368 = vmatmul.bf16.vlgmr.msra.gmra.mxu0 %v260_v19 }
  0x6e   : > { %381 = vmatmul.bf16.vlgmr.msra.gmra.mxu1 %v261_v20 }
  0xea   : > { %v369_v21 = vpop.f32.mrf.mxu0 }
  0xeb   : > { %v382_v22 = vpop.f32.mrf.mxu1 }
  0xec   : > { %v383_v23 = vadd.f32 %v382_v22, %v369_v21 }
  0xee   : > { %387 = vst [vmem:[%s209_s28] sm:$0xff] %v383_v23 }
  0xef   : > { %804 = shalt.err (!%p801_p13)
}
  0xf0   : > { %607 = dma.vmem_to_hbm [thread:$0]  (%p996_p10), %s402_s4, 128, %s404_s1, %s389_s10  }
  0xf2   : > { %v371_v24 = vpop.f32.mrf.mxu0 }
  0xf3   : > { %v384_v25 = vpop.f32.mrf.mxu1 }
  0xf4 PF: > { %s415_s6 = sand.u32 1, %s857_s16   ;;  %p1151_p0 = scmp.ge.s32.totalorder %s889_s23, 2 }
  0xf5   : > { %s416_s15 = scalar_lea.sflag [#allocation6], %s415_s6 }
  0xf6   : > { %p620_p2 = pnand %p1151_p0, %p1003_p1 }
  0xf8   : > { %p621_p6 = pneg %p620_p2 }
  0xfa   : > { %852 = dma.done.wait (%p621_p6), %s416_s15, 128  }
  0xfb   : > { %854 = vsyncadd (%p621_p6), %s416_s15, 4294967168  ;;  %s28_s23 = sadd.s32 1, %s889_s23   ;;  %s1152_s9 = sld [smem:[#allocation16_spill]] }
  0xfc   : > { %p25_p9 = scmp.ge.s32.totalorder %s28_s23, 4   ;;  %s1153_s18 = sld [smem:[#allocation19_spill]] }
  0xfd   : > { %s1154_s5 = sld [smem:[#allocation17_spill]]  ;;  %s1157_s16 = smov %s861_s17 }
  0xfe   : > { %s1155_s20 = sld [smem:[#allocation20_spill]]  ;;  %s1159_s19 = smov %s873_s0 }
  0xff   : > { %s1156_s7 = sld [smem:[#allocation18_spill]]  ;;  %s1161_s21 = smov %s885_s22 }
 0x101   : > { %s1158_s17 = smov %s1152_s9  ;;  %27 = sbr.rel (!%p25_p9) target bundleno = 15 (0xf), region = 83 }
 0x103   : > { %s1160_s0 = smov %s1154_s5 }
 0x105   : > { %s1162_s22 = smov %s1156_s7 }
 0x106   :  { %422 = vsyncpa [#allocation5], 1 }
 0x107   :  { %424 = vsyncpa [#allocation5 + $0x1], 1 }
 0x108   :  { %425 = vsyncpa [#allocation8], 1 }
 0x109   :  { %427 = vsyncpa [#allocation8 + $0x1], 1 }
 0x10a   :  { %428 = vsyncpa [#allocation6], 1 }
 0x10b   :  { %430 = vsyncpa [#allocation6 + $0x1], 1 }

</bundles_post_ra>
